<compile_context>
chip_gen: v7x
topology: tpu7x:2x2x1
jax: 0.10.0
libtpu: 0.0.40
codegen_flags: <defaults>
</compile_context>

<pallas_src>
import jax
import jax.numpy as jnp
from jax import lax
from jax.experimental import pallas as pl
from jax.experimental.pallas import tpu as pltpu

EPS = 1e-5


def bn_relu_kernel(x_ref, gamma_ref, beta_ref, o_ref):
    # x_ref:     [N, Cb, L]   (channels on sublanes, spatial on lanes)
    # gamma_ref: [1, Cb, 1]
    # beta_ref:  [1, Cb, 1]
    x = x_ref[...].astype(jnp.float32)
    n_elems = x.shape[0] * x.shape[2]
    inv_n = 1.0 / float(n_elems)

    # One-pass per-channel statistics (biased variance, PyTorch training mode).
    mean = jnp.sum(x, axis=(0, 2), keepdims=True) * inv_n          # [1, Cb, 1]
    mean_sq = jnp.sum(x * x, axis=(0, 2), keepdims=True) * inv_n   # [1, Cb, 1]
    var = jnp.maximum(mean_sq - mean * mean, 0.0)                  # clamp: no NaN
    inv_std = lax.rsqrt(var + EPS)                                 # EUP, ~free

    # Fold BN affine into a single per-channel scale/shift.
    scale = gamma_ref[...] * inv_std                               # [1, Cb, 1]
    shift = beta_ref[...] - mean * scale                           # [1, Cb, 1]

    # Elementwise pass reuses x already live in vregs (no second VMEM read).
    y = x * scale + shift
    o_ref[...] = jnp.maximum(y, 0.0).astype(o_ref.dtype)           # ReLU


def _pick_channel_block(C, target=96):
    """Largest divisor of C that is <= target and a multiple of 8 (or C itself)."""
    for cb in range(min(target, C), 0, -1):
        if C % cb == 0 and (cb % 8 == 0 or cb == C):
            return cb
    return C


def batchnorm_relu(x_nchw, gamma, beta):
    """Training-mode BatchNorm2d + ReLU. x_nchw: [N, C, H, W]; gamma, beta: [C]."""
    N, C, H, W = x_nchw.shape
    L = H * W

    # Free view: NCHW -> [N, C, H*W]; channels stay on sublanes, spatial on lanes.
    x3d = x_nchw.reshape(N, C, L)
    gamma3d = gamma.reshape(1, C, 1)
    beta3d = beta.reshape(1, C, 1)

    Cb = _pick_channel_block(C)
    grid = (C // Cb,)

    out3d = pl.pallas_call(
        bn_relu_kernel,
        out_shape=jax.ShapeDtypeStruct((N, C, L), x_nchw.dtype),
        grid=grid,
        in_specs=[
            pl.BlockSpec((N, Cb, L), lambda i: (0, i, 0)),
            pl.BlockSpec((1, Cb, 1), lambda i: (0, i, 0)),
            pl.BlockSpec((1, Cb, 1), lambda i: (0, i, 0)),
        ],
        out_specs=pl.BlockSpec((N, Cb, L), lambda i: (0, i, 0)),
        compiler_params=pltpu.CompilerParams(
            dimension_semantics=("parallel",)),
    )(x3d, gamma3d, beta3d)

    return out3d.reshape(N, C, H, W)  # free view back to NCHW


def reference(x_nchw, gamma, beta):
    # Pure-JAX reference of training-mode BatchNorm2d + ReLU.
    mean = jnp.mean(x_nchw, axis=(0, 2, 3), keepdims=True)
    var = jnp.mean((x_nchw - mean) ** 2, axis=(0, 2, 3), keepdims=True)
    y = (x_nchw - mean) * lax.rsqrt(var + EPS)
    y = y * gamma.reshape(1, -1, 1, 1) + beta.reshape(1, -1, 1, 1)
    return jnp.maximum(y, 0.0)


# TODO(synk): running_mean / running_var buffer updates are not emitted (they are
# not part of the module's forward output); they are cheap byproducts if needed.

if __name__ == "__main__":
    key = jax.random.PRNGKey(0)
    kx, kg, kb = jax.random.split(key, 3)

    N, C, H, W = 1, 576, 14, 14  # shape implied by BatchNorm2d(576) and x269
    x = jax.random.normal(kx, (N, C, H, W), dtype=jnp.float32)
    # PyTorch default affine params are ones/zeros; use random values to
    # exercise the affine path deterministically.
    gamma = 1.0 + 0.1 * jax.random.normal(kg, (C,), dtype=jnp.float32)
    beta = 0.1 * jax.random.normal(kb, (C,), dtype=jnp.float32)

    out = batchnorm_relu(x, gamma, beta)
    out = jax.block_until_ready(out)

    ref = reference(x, gamma, beta)
    assert out.shape == (N, C, H, W)
    assert jnp.max(jnp.abs(out - ref)) < 1e-4, "mismatch vs reference"

    print("KERNEL_OK")
</pallas_src>

<mosaic_0001>
module attributes {stable_mosaic.version = 11 : i64} {
  func.func @bn_relu_kernel(%arg0: i32, %arg1: memref<1x96x196xf32, #tpu.memory_space<vmem>>, %arg2: memref<1x96x1xf32, #tpu.memory_space<vmem>>, %arg3: memref<1x96x1xf32, #tpu.memory_space<vmem>>, %arg4: memref<1x96x196xf32, #tpu.memory_space<vmem>>) attributes {dimension_semantics = [#tpu.dimension_semantics<parallel>], iteration_bounds = array<i64: 6>, scalar_prefetch = 0 : i64, scratch_operands = 0 : i64, tpu.core_type = #tpu.core_type<tc>, window_params = [{transform_indices = @transform_0, window_bounds = array<i64: 1, 96, 196>}, {transform_indices = @transform_1, window_bounds = array<i64: 1, 96, 1>}, {transform_indices = @transform_2, window_bounds = array<i64: 1, 96, 1>}, {transform_indices = @transform_3, window_bounds = array<i64: 1, 96, 196>}]} {
    %c0 = arith.constant 0 : index
    %c0_0 = arith.constant 0 : index
    %c0_1 = arith.constant 0 : index
    %0 = vector.load %arg1[%c0, %c0_0, %c0_1] : memref<1x96x196xf32, #tpu.memory_space<vmem>>, vector<1x96x196xf32>
    %cst = arith.constant dense<0.000000e+00> : vector<96xf32>
    %1 = vector.multi_reduction <add>, %0, %cst [0, 2] : vector<1x96x196xf32> to vector<96xf32>
    %2 = vector.shape_cast %1 : vector<96xf32> to vector<1x96x1xf32>
    %cst_2 = arith.constant 0.00510204071 : f32
    %3 = vector.broadcast %cst_2 : f32 to vector<1x96x1xf32>
    %4 = arith.mulf %2, %3 : vector<1x96x1xf32>
    %5 = arith.mulf %0, %0 : vector<1x96x196xf32>
    %cst_3 = arith.constant dense<0.000000e+00> : vector<96xf32>
    %6 = vector.multi_reduction <add>, %5, %cst_3 [0, 2] : vector<1x96x196xf32> to vector<96xf32>
    %7 = vector.shape_cast %6 : vector<96xf32> to vector<1x96x1xf32>
    %cst_4 = arith.constant 0.00510204071 : f32
    %8 = vector.broadcast %cst_4 : f32 to vector<1x96x1xf32>
    %9 = arith.mulf %7, %8 : vector<1x96x1xf32>
    %10 = arith.mulf %4, %4 : vector<1x96x1xf32>
    %11 = arith.subf %9, %10 : vector<1x96x1xf32>
    %cst_5 = arith.constant 0.000000e+00 : f32
    %12 = vector.broadcast %cst_5 : f32 to vector<1x96x1xf32>
    %13 = arith.maximumf %11, %12 : vector<1x96x1xf32>
    %cst_6 = arith.constant 9.99999974E-6 : f32
    %14 = vector.broadcast %cst_6 : f32 to vector<1x96x1xf32>
    %15 = arith.addf %13, %14 : vector<1x96x1xf32>
    %16 = math.rsqrt %15 : vector<1x96x1xf32>
    %c0_7 = arith.constant 0 : index
    %c0_8 = arith.constant 0 : index
    %c0_9 = arith.constant 0 : index
    %17 = vector.load %arg2[%c0_7, %c0_8, %c0_9] : memref<1x96x1xf32, #tpu.memory_space<vmem>>, vector<1x96x1xf32>
    %18 = arith.mulf %17, %16 : vector<1x96x1xf32>
    %c0_10 = arith.constant 0 : index
    %c0_11 = arith.constant 0 : index
    %c0_12 = arith.constant 0 : index
    %19 = vector.load %arg3[%c0_10, %c0_11, %c0_12] : memref<1x96x1xf32, #tpu.memory_space<vmem>>, vector<1x96x1xf32>
    %20 = arith.mulf %4, %18 : vector<1x96x1xf32>
    %21 = arith.subf %19, %20 : vector<1x96x1xf32>
    %22 = vector.broadcast %18 : vector<1x96x1xf32> to vector<1x96x196xf32>
    %23 = arith.mulf %0, %22 : vector<1x96x196xf32>
    %24 = vector.broadcast %21 : vector<1x96x1xf32> to vector<1x96x196xf32>
    %25 = arith.addf %23, %24 : vector<1x96x196xf32>
    %cst_13 = arith.constant 0.000000e+00 : f32
    %26 = vector.broadcast %cst_13 : f32 to vector<1x96x196xf32>
    %27 = arith.maximumf %25, %26 : vector<1x96x196xf32>
    %c0_14 = arith.constant 0 : index
    %c0_15 = arith.constant 0 : index
    %c0_16 = arith.constant 0 : index
    %28 = vector.load %arg4[%c0_14, %c0_15, %c0_16] : memref<1x96x196xf32, #tpu.memory_space<vmem>>, vector<1x96x196xf32>
    tpu.vector_store %arg4[%c0_14, %c0_15, %c0_16], %27 {strides = array<i32>} : memref<1x96x196xf32, #tpu.memory_space<vmem>>, vector<1x96x196xf32>,
    return
  }
  func.func @transform_0(%arg0: i32) -> (i32, i32, i32) {
    %c0_i32 = arith.constant 0 : i32
    %c0_i32_0 = arith.constant 0 : i32
    %c0_i32_1 = arith.constant 0 : i32
    return %c0_i32, %arg0, %c0_i32_0 : i32, i32, i32
  }
  func.func @transform_1(%arg0: i32) -> (i32, i32, i32) {
    %c0_i32 = arith.constant 0 : i32
    %c0_i32_0 = arith.constant 0 : i32
    %c0_i32_1 = arith.constant 0 : i32
    return %c0_i32, %arg0, %c0_i32_0 : i32, i32, i32
  }
  func.func @transform_2(%arg0: i32) -> (i32, i32, i32) {
    %c0_i32 = arith.constant 0 : i32
    %c0_i32_0 = arith.constant 0 : i32
    %c0_i32_1 = arith.constant 0 : i32
    return %c0_i32, %arg0, %c0_i32_0 : i32, i32, i32
  }
  func.func @transform_3(%arg0: i32) -> (i32, i32, i32) {
    %c0_i32 = arith.constant 0 : i32
    %c0_i32_0 = arith.constant 0 : i32
    %c0_i32_1 = arith.constant 0 : i32
    return %c0_i32, %arg0, %c0_i32_0 : i32, i32, i32
  }
}

</mosaic_0001>

<bundles_post_ra>
// kernel: tpu_custom_call.1
= control target key start
LH: loop header
LB: loop body
LE: loop exit
PB: predicated region body
PF: predicated region fallthrough
CT: control target
= control target key end

     0   :  { %s889_s12 = smov 0   ;;  %s1274_s0 = inlined_call_operand.vmem [shape: f32[1,576,196], index: 0, kind: input, shape index: {}]   ;;  %s1275_s1 = inlined_call_operand.vmem [shape: f32[1,576,1], index: 1, kind: input, shape index: {}]   ;;  %s1276_s2 = inlined_call_operand.vmem [shape: f32[1,576,1], index: 2, kind: input, shape index: {}]   ;;  %s1277_s3 = inlined_call_operand.vmem [shape: f32[1,576,196], index: 3, kind: output, shape index: {}]  }
   0x1 LB: > { %s810_s13 = sadd.s32 4294967295, %s866_s12   ;;  %p814_p0 = scmp.ge.s32.totalorder %s866_s12, 1  ;;  %s866_s12 = sphi %s889_s12, %s13_s12  }
   0x2   : > { %p161_p1 = scmp.lt.s32.totalorder %s866_s12, 7 }
   0x4   : > { %p162_p2 = pnand %p814_p0, %p161_p1 }
   0x5   : > { %s197_s14 = smul.u32 (!%p162_p2), 12, %s810_s13  ;;  %vm247_vm0 = vcmask (!%p162_p2), 556032  }
   0x6   : > { %165 = sbr.rel (%p162_p2) target bundleno = 397 (0x18d), region = 32 }
   0x7   : > { %p198_p3 = scmp.lt.s32.totalorder (!%p162_p2), %s197_s14, 71 }
   0xd   : > { %s1279_s14 = smov (!%p198_p3, %s197_s14), 71 }
   0xe   : > { %s823_s15 = sshll.u32 %s1279_s14, 4  ;;  %s817_s19 = sshll.u32 %s1279_s14, 3 }
   0xf   : > { %s905_s18 = scalar_lea.vmem %s1274_s0, %s823_s15  ;;  %s1117_s22 = scalar_lea.vmem %s1275_s1, %s817_s19 }
  0x10   : > { %v908_v0 = vld [vmem:[%s905_s18 + $0x20] sm:$0xff]  ;;  %v911_v1 = vld [vmem:[%s905_s18 + $0x28] sm:$0xff]  ;;  %v922_v5 = vld [vmem:[%s905_s18 + $0x30] sm:$0xff]  ;;  %s1157_s25 = scalar_lea.vmem %s1276_s2, %s817_s19  ;;  %s1199_s28 = scalar_lea.vmem %s1277_s3, %s823_s15 }
  0x11   : > { %v914_v2 = vld [vmem:[%s905_s18] sm:$0xff]  ;;  %v256_v3 = vsel %vm247_vm0, %v911_v1, 0.0  ;;  %v919_v4 = vld [vmem:[%s905_s18 + $0x8] sm:$0xff]  ;;  %v925_v6 = vld [vmem:[%s905_s18 + $0x38] sm:$0xff]  ;;  %v313_v55 = vmul.f32 %v911_v1, %v911_v1  ;;  %v314_v57 = vmul.f32 %v922_v5, %v922_v5  ;;  %v312_v60 = vmul.f32 %v908_v0, %v908_v0 }
  0x12   : > { %v257_v7 = vadd.f32 %v256_v3, %v908_v0  ;;  %v248_v8 = vsel %vm247_vm0, %v919_v4, 0.0  ;;  %v260_v9 = vsel %vm247_vm0, %v925_v6, 0.0  ;;  %v933_v10 = vld [vmem:[%s905_s18 + $0x10] sm:$0xff]  ;;  %v936_v11 = vld [vmem:[%s905_s18 + $0x18] sm:$0xff]  ;;  %v945_v15 = vld [vmem:[%s905_s18 + $0x48] sm:$0xff]  ;;  %v309_v47 = vmul.f32 %v919_v4, %v919_v4 }
  0x13   : > { %v249_v12 = vadd.f32 %v248_v8, %v914_v2  ;;  %v252_v13 = vsel %vm247_vm0, %v936_v11, 0.0  ;;  %v942_v14 = vld [vmem:[%s905_s18 + $0x58] sm:$0xff]  ;;  %v261_v16 = vadd.f32 %v260_v9, %v922_v5  ;;  %v950_v18 = vld [vmem:[%s905_s18 + $0x50] sm:$0xff]  ;;  %v955_v20 = vld [vmem:[%s905_s18 + $0x40] sm:$0xff]  ;;  %v264_v21 = vsel %vm247_vm0, %v945_v15, 0.0 }
  0x14   : > { %258 = vadd.xlane.f32.xlu1 %v257_v7  ;;  %v253_v17 = vadd.f32 %v252_v13, %v933_v10  ;;  %v268_v19 = vsel %vm247_vm0, %v942_v14, 0.0  ;;  %v960_v22 = vld [vmem:[%s905_s18 + $0x78] sm:$0xff]  ;;  %v963_v23 = vld [vmem:[%s905_s18 + $0x68] sm:$0xff]  ;;  %v265_v25 = vadd.f32 %v264_v21, %v955_v20  ;;  %v968_v26 = vld [vmem:[%s905_s18 + $0x70] sm:$0xff]  ;;  %v311_v44 = vmul.f32 %v936_v11, %v936_v11 }
  0x15   : > { %250 = vadd.xlane.f32.xlu0 %v249_v12  ;;  %v269_v24 = vadd.f32 %v268_v19, %v950_v18  ;;  %v276_v27 = vsel %vm247_vm0, %v960_v22, 0.0  ;;  %v973_v28 = vld [vmem:[%s905_s18 + $0x60] sm:$0xff]  ;;  %v272_v29 = vsel %vm247_vm0, %v963_v23, 0.0  ;;  %v978_v30 = vld [vmem:[%s905_s18 + $0x98] sm:$0xff]  ;;  %v981_v31 = vld [vmem:[%s905_s18 + $0x88] sm:$0xff]  ;;  %v310_v49 = vmul.f32 %v933_v10, %v933_v10 }
  0x16   : > { %v277_v32 = vadd.f32 %v276_v27, %v968_v26  ;;  %v273_v33 = vadd.f32 %v272_v29, %v973_v28  ;;  %v986_v34 = vld [vmem:[%s905_s18 + $0x90] sm:$0xff]  ;;  %v284_v35 = vsel %vm247_vm0, %v978_v30, 0.0  ;;  %v991_v36 = vld [vmem:[%s905_s18 + $0x80] sm:$0xff]  ;;  %v280_v37 = vsel %vm247_vm0, %v981_v31, 0.0  ;;  %v996_v38 = vld [vmem:[%s905_s18 + $0xb8] sm:$0xff] }
  0x17   : > { %v999_v39 = vld [vmem:[%s905_s18 + $0xa8] sm:$0xff]  ;;  %v285_v40 = vadd.f32 %v284_v35, %v986_v34  ;;  %v281_v41 = vadd.f32 %v280_v37, %v991_v36  ;;  %v1004_v42 = vld [vmem:[%s905_s18 + $0xb0] sm:$0xff]  ;;  %v292_v43 = vsel %vm247_vm0, %v996_v38, 0.0  ;;  %v1011_v45 = vld [vmem:[%s905_s18 + $0xa0] sm:$0xff]  ;;  %v336_v51 = vsel %vm247_vm0, %v311_v44, 0.0 }
  0x18   : > { %262 = vadd.xlane.f32.xlu1 %v261_v16  ;;  %v288_v46 = vsel %vm247_vm0, %v999_v39, 0.0  ;;  %v293_v48 = vadd.f32 %v292_v43, %v1004_v42  ;;  %v308_v52 = vmul.f32 %v914_v2, %v914_v2  ;;  %v315_v53 = vmul.f32 %v925_v6, %v925_v6 }
  0x19   : > { %254 = vadd.xlane.f32.xlu0 %v253_v17  ;;  %v289_v50 = vadd.f32 %v288_v46, %v1011_v45  ;;  %v332_v54 = vsel %vm247_vm0, %v309_v47, 0.0  ;;  %v337_v56 = vadd.f32 %v336_v51, %v310_v49  ;;  %v319_v61 = vmul.f32 %v942_v14, %v942_v14 }
  0x1a   : > { %v333_v58 = vadd.f32 %v332_v54, %v308_v52  ;;  %v344_v59 = vsel %vm247_vm0, %v315_v53, 0.0  ;;  %v340_v62 = vsel %vm247_vm0, %v313_v55, 0.0  ;;  %v317_v63 = vmul.f32 %v945_v15, %v945_v15 }
  0x1b   : > { %v345_v3 = vadd.f32 %v344_v59, %v314_v57  ;;  %v318_v7 = vmul.f32 %v950_v18, %v950_v18  ;;  %v341_v8 = vadd.f32 %v340_v62, %v312_v60  ;;  %v352_v9 = vsel %vm247_vm0, %v319_v61, 0.0 }
  0x1c   : > { %270 = vadd.xlane.f32.xlu1 %v269_v24  ;;  %v316_v12 = vmul.f32 %v955_v20, %v955_v20  ;;  %v323_v13 = vmul.f32 %v960_v22, %v960_v22  ;;  %v348_v16 = vsel %vm247_vm0, %v317_v63, 0.0  ;;  %v321_v17 = vmul.f32 %v963_v23, %v963_v23 }
  0x1d   : > { %266 = vadd.xlane.f32.xlu0 %v265_v25  ;;  %v353_v19 = vadd.f32 %v352_v9, %v318_v7  ;;  %v322_v21 = vmul.f32 %v968_v26, %v968_v26  ;;  %v320_v27 = vmul.f32 %v973_v28, %v973_v28  ;;  %v327_v29 = vmul.f32 %v978_v30, %v978_v30 }
  0x1e   : > { %v349_v24 = vadd.f32 %v348_v16, %v316_v12  ;;  %v360_v25 = vsel %vm247_vm0, %v323_v13, 0.0  ;;  %v326_v37 = vmul.f32 %v986_v34, %v986_v34  ;;  %v324_v43 = vmul.f32 %v991_v36, %v991_v36 }
  0x1f   : > { %v361_v35 = vadd.f32 %v360_v25, %v322_v21  ;;  %v331_v44 = vmul.f32 %v996_v38, %v996_v38  ;;  %v329_v47 = vmul.f32 %v999_v39, %v999_v39  ;;  %v330_v49 = vmul.f32 %v1004_v42, %v1004_v42 }
  0x20   : > { %278 = vadd.xlane.f32.xlu1 %v277_v32  ;;  %v356_v32 = vsel %vm247_vm0, %v321_v17, 0.0  ;;  %v328_v52 = vmul.f32 %v1011_v45, %v1011_v45 }
  0x21   : > { %274 = vadd.xlane.f32.xlu0 %v273_v33  ;;  %v325_v33 = vmul.f32 %v981_v31, %v981_v31  ;;  %v376_v51 = vsel %vm247_vm0, %v331_v44, 0.0  ;;  %v372_v53 = vsel %vm247_vm0, %v329_v47, 0.0 }
  0x22   : > { %v377_v54 = vadd.f32 %v376_v51, %v330_v49  ;;  %v373_v55 = vadd.f32 %v372_v53, %v328_v52 }
  0x23   : > { %v364_v46 = vsel %vm247_vm0, %v325_v33, 0.0 }
  0x24   : > { %286 = vadd.xlane.f32.xlu1 %v285_v40  ;;  %v357_v40 = vadd.f32 %v356_v32, %v320_v27 }
  0x25   : > { %282 = vadd.xlane.f32.xlu0 %v281_v41  ;;  %v368_v41 = vsel %vm247_vm0, %v327_v29, 0.0 }
  0x28   : > { %294 = vadd.xlane.f32.xlu1 %v293_v48  ;;  %v369_v48 = vadd.f32 %v368_v41, %v326_v37 }
  0x29   : > { %290 = vadd.xlane.f32.xlu0 %v289_v50  ;;  %v365_v50 = vadd.f32 %v364_v46, %v324_v43 }
  0x2c   : > { %338 = vadd.xlane.f32.xlu1 %v337_v56  ;;  %v868_v56 = vmov 0  }
  0x2d   : > { %334 = vadd.xlane.f32.xlu0 %v333_v58  ;;  %835 = vset.pattern.permute.xlu1 %v868_v56 }
  0x2e   : > { %834 = vset.pattern.permute.xlu0 %v868_v56 }
  0x30   : > { %346 = vadd.xlane.f32.xlu1 %v345_v3 }
  0x31   : > { %342 = vadd.xlane.f32.xlu0 %v341_v8 }
  0x34   : > { %354 = vadd.xlane.f32.xlu1 %v353_v19 }
  0x35   : > { %350 = vadd.xlane.f32.xlu0 %v349_v24 }
  0x38   : > { %362 = vadd.xlane.f32.xlu1 %v361_v35 }
  0x39   : > { %358 = vadd.xlane.f32.xlu0 %v357_v40 }
  0x3c   : > { %370 = vadd.xlane.f32.xlu1 %v369_v48 }
  0x3d   : > { %366 = vadd.xlane.f32.xlu0 %v365_v50 }
  0x40   : > { %378 = vadd.xlane.f32.xlu1 %v377_v54 }
  0x41   : > { %374 = vadd.xlane.f32.xlu0 %v373_v55 }
  0xa1   : > { %v259_v57 = vpop.xlane.xlu1 %258 }
  0xa2   : > { %v251_v58 = vpop.xlane.xlu0 %250  ;;  %v1087_v27 = vmul.f32 0.0051020407, %v259_v57 }
  0xa3   : > { %v1081_v16 = vmul.f32 0.0051020407, %v251_v58 }
  0xa4   : > { %v394_v48 = vmul.f32 %v1087_v27, %v1087_v27 }
  0xa5   : > { %v263_v59 = vpop.xlane.xlu1 %262  ;;  %v392_v29 = vmul.f32 %v1081_v16, %v1081_v16 }
  0xa6   : > { %v255_v60 = vpop.xlane.xlu0 %254  ;;  %v1083_v19 = vmul.f32 0.0051020407, %v263_v59 }
  0xa7   : > { %v1077_v12 = vmul.f32 0.0051020407, %v255_v60 }
  0xa8   : > { %v395_v41 = vmul.f32 %v1083_v19, %v1083_v19 }
  0xa9   : > { %v271_v61 = vpop.xlane.xlu1 %270  ;;  %v393_v21 = vmul.f32 %v1077_v12, %v1077_v12 }
  0xaa   : > { %v267_v62 = vpop.xlane.xlu0 %266  ;;  %v1091_v35 = vmul.f32 0.0051020407, %v271_v61 }
  0xab   : > { %v1095_v43 = vmul.f32 0.0051020407, %v267_v62 }
  0xac   : > { %v397_v53 = vmul.f32 %v1091_v35, %v1091_v35 }
  0xad   : > { %v279_v63 = vpop.xlane.xlu1 %278  ;;  %v396_v57 = vmul.f32 %v1095_v43, %v1095_v43 }
  0xae   : > { %v275_v3 = vpop.xlane.xlu0 %274 }
  0xaf   : > { %v1103_v61 = vmul.f32 0.0051020407, %v275_v3 }
  0xb1   : > { %v287_v7 = vpop.xlane.xlu1 %286 }
  0xb2   : > { %v1075_v8 = vpop.xlane.xlu0 %282 }
  0xb5   : > { %v295_v9 = vpop.xlane.xlu1 %294 }
  0xb6   : > { %v1079_v13 = vpop.xlane.xlu0 %290 }
  0xb9   : > { %v339_v17 = vpop.xlane.xlu1 %338 }
  0xba   : > { %v381_v24 = vmul.f32 0.0051020407, %v339_v17  ;;  %v335_v25 = vpop.xlane.xlu0 %334 }
  0xbb   : > { %v380_v32 = vmul.f32 0.0051020407, %v335_v25 }
  0xbc   : > { %v405_v33 = vsub.f32 %v381_v24, %v393_v21 }
  0xbd   : > { %v404_v37 = vsub.f32 %v380_v32, %v392_v29  ;;  %v347_v40 = vpop.xlane.xlu1 %346 }
  0xbe   : > { %v417_v44 = vmax.f32 %v405_v33, 0.0  ;;  %v383_v46 = vmul.f32 0.0051020407, %v347_v40  ;;  %v343_v47 = vpop.xlane.xlu0 %342  ;;  %v1106_v33 = vmul.f32 0.0051020407, %v279_v63 }
  0xbf   : > { %v416_v49 = vmax.f32 %v404_v37, 0.0  ;;  %v382_v50 = vmul.f32 0.0051020407, %v343_v47  ;;  %v1108_v37 = vmul.f32 0.0051020407, %v287_v7 }
  0xc0   : > { %v429_v51 = vadd.f32 1e-05, %v417_v44  ;;  %v407_v52 = vsub.f32 %v383_v46, %v395_v41  ;;  %v398_v41 = vmul.f32 %v1103_v61, %v1103_v61 }
  0xc1   : > { %v428_v54 = vadd.f32 1e-05, %v416_v49  ;;  %v406_v55 = vsub.f32 %v382_v50, %v394_v48  ;;  %v355_v56 = vpop.xlane.xlu1 %354  ;;  %v399_v49 = vmul.f32 %v1106_v33, %v1106_v33  ;;  %v401_v50 = vmul.f32 %v1108_v37, %v1108_v37 }
  0xc2   : > { %836 = vrsqrt.f32 %v429_v51  ;;  %v419_v58 = vmax.f32 %v407_v52, 0.0  ;;  %v385_v59 = vmul.f32 0.0051020407, %v355_v56  ;;  %v351_v60 = vpop.xlane.xlu0 %350  ;;  %v1123_v51 = vmul.f32 0.0051020407, %v295_v9  ;;  %v452_v56 = vld [vmem:[%s1117_s22] sm:$0xff] }
  0xc3   : > { %838 = vrsqrt.f32 %v428_v54  ;;  %v418_v62 = vmax.f32 %v406_v55, 0.0  ;;  %v384_v17 = vmul.f32 0.0051020407, %v351_v60  ;;  %v453_v54 = vld [vmem:[%s1117_s22 + $0x8] sm:$0xff]  ;;  %v1127_v55 = vmul.f32 0.0051020407, %v1075_v8 }
  0xc4   : > { %v409_v21 = vsub.f32 %v385_v59, %v397_v53  ;;  %v431_v24 = vadd.f32 1e-05, %v419_v58  ;;  %v403_v9 = vmul.f32 %v1123_v51, %v1123_v51 }
  0xc5   : > { %v430_v25 = vadd.f32 1e-05, %v418_v62  ;;  %v408_v29 = vsub.f32 %v384_v17, %v396_v57  ;;  %v363_v32 = vpop.xlane.xlu1 %362 }
  0xc6   : > { %v359_v40 = vpop.xlane.xlu0 %358  ;;  %v421_v46 = vmax.f32 %v409_v21, 0.0  ;;  %v387_v63 = vmul.f32 0.0051020407, %v363_v32 }
  0xc7   : > { %840 = vrsqrt.f32 %v430_v25  ;;  %v420_v3 = vmax.f32 %v408_v29, 0.0  ;;  %v386_v44 = vmul.f32 0.0051020407, %v359_v40 }
  0xc8   : > { %842 = vrsqrt.f32 %v431_v24  ;;  %v433_v58 = vadd.f32 1e-05, %v421_v46  ;;  %v411_v59 = vsub.f32 %v387_v63, %v399_v49 }
  0xc9   : > { %v432_v7 = vadd.f32 1e-05, %v420_v3  ;;  %v410_v47 = vsub.f32 %v386_v44, %v398_v41  ;;  %v371_v48 = vpop.xlane.xlu1 %370  ;;  %v400_v41 = vmul.f32 %v1127_v55, %v1127_v55  ;;  %v1137_v3 = vmul.f32 0.0051020407, %v1079_v13  ;;  %v454_v44 = vld [vmem:[%s1117_s22 + $0x10] sm:$0xff] }
  0xca   : > { %v389_v52 = vmul.f32 0.0051020407, %v371_v48  ;;  %v367_v53 = vpop.xlane.xlu0 %366 }
  0xcb   : > { %844 = vrsqrt.f32 %v432_v7  ;;  %v422_v17 = vmax.f32 %v410_v47, 0.0  ;;  %v388_v21 = vmul.f32 0.0051020407, %v367_v53  ;;  %v423_v47 = vmax.f32 %v411_v59, 0.0 }
  0xcc   : > { %v837_v57 = vpop.eup %836  ;;  %v413_v60 = vsub.f32 %v389_v52, %v401_v50  ;;  %846 = vrsqrt.f32 %v433_v58 }
  0xcd   : > { %v839_v62 = vpop.eup %838  ;;  %v379_v24 = vpop.xlane.xlu1 %378  ;;  %v465_v25 = vmul.f32 %v837_v57, %v453_v54  ;;  %v434_v48 = vadd.f32 1e-05, %v422_v17  ;;  %v412_v49 = vsub.f32 %v388_v21, %v400_v41  ;;  %v402_v54 = vmul.f32 %v1137_v3, %v1137_v3  ;;  %v456_v21 = vld [vmem:[%s1117_s22 + $0x20] sm:$0xff]  ;;  %v457_v41 = vld [vmem:[%s1117_s22 + $0x28] sm:$0xff] }
  0xce   : > { %v425_v29 = vmax.f32 %v413_v60, 0.0  ;;  %v391_v32 = vmul.f32 0.0051020407, %v379_v24  ;;  %v375_v40 = vpop.xlane.xlu0 %374  ;;  %v1132_v8 = vmul.f32 %v839_v62, %v452_v56  ;;  %v455_v56 = vld [vmem:[%s1117_s22 + $0x18] sm:$0xff]  ;;  %v435_v58 = vadd.f32 1e-05, %v423_v47 }
  0xcf   : > { %519 = vperm.xlu1 %835, %v465_v25   ;;  %v390_v50 = vmul.f32 0.0051020407, %v375_v40  ;;  %v424_v59 = vmax.f32 %v412_v49, 0.0  ;;  %v461_v40 = vld [vmem:[%s1117_s22 + $0x48] sm:$0xff]  ;;  %v463_v47 = vld [vmem:[%s1117_s22 + $0x58] sm:$0xff]  ;;  %v458_v49 = vld [vmem:[%s1117_s22 + $0x30] sm:$0xff] }
  0xd0   : > { %v437_v46 = vadd.f32 1e-05, %v425_v29  ;;  %v415_v63 = vsub.f32 %v391_v32, %v403_v9  ;;  %514 = vperm.xlu0 %834, %v1132_v8  }
  0xd1   : > { %v841_v7 = vpop.eup %840  ;;  %v414_v60 = vsub.f32 %v390_v50, %v402_v54  ;;  %v436_v24 = vadd.f32 1e-05, %v424_v59 }
  0xd2   : > { %848 = vrsqrt.f32 %v437_v46  ;;  %v427_v52 = vmax.f32 %v415_v63, 0.0  ;;  %v1141_v53 = vmul.f32 %v841_v7, %v454_v44  ;;  %v843_v13 = vpop.eup %842 }
  0xd3   : > { %850 = vrsqrt.f32 %v434_v48  ;;  %v467_v62 = vmul.f32 %v843_v13, %v455_v56  ;;  %v426_v9 = vmax.f32 %v414_v60, 0.0  ;;  %v489_v13 = vmul.f32 %v465_v25, %v1077_v12  ;;  %v477_v56 = vld [vmem:[%s1157_s25 + $0x8] sm:$0xff] }
  0xd4   : > { %v439_v57 = vadd.f32 1e-05, %v427_v52  ;;  %524 = vperm.xlu1 %835, %v1141_v53  }
  0xd5   : > { %v845_v17 = vpop.eup %844  ;;  %v438_v46 = vadd.f32 1e-05, %v426_v9  ;;  %v501_v59 = vsub.f32 %v477_v56, %v489_v13  ;;  %v491_v60 = vmul.f32 %v467_v62, %v1083_v19  ;;  %v460_v9 = vld [vmem:[%s1117_s22 + $0x40] sm:$0xff]  ;;  %v485_v13 = vld [vmem:[%s1157_s25 + $0x48] sm:$0xff]  ;;  %v490_v56 = vmul.f32 %v1141_v53, %v1087_v27  ;;  %v482_v53 = vld [vmem:[%s1157_s25 + $0x30] sm:$0xff] }
  0xd6   : > { %852 = vrsqrt.f32 %v439_v57  ;;  %v847_v29 = vpop.eup %846  ;;  %v468_v32 = vmul.f32 %v845_v17, %v456_v21  ;;  %v479_v21 = vld [vmem:[%s1157_s25 + $0x18] sm:$0xff] }
  0xd7   : > { %854 = vrsqrt.f32 %v435_v58  ;;  %v469_v7 = vmul.f32 %v847_v29, %v457_v41  ;;  %v459_v58 = vld [vmem:[%s1117_s22 + $0x38] sm:$0xff]  ;;  %v503_v12 = vsub.f32 %v479_v21, %v491_v60 }
  0xd8   : > { %529 = vperm.xlu1 %835, %v467_v62   ;;  %856 = vrsqrt.f32 %v436_v24 }
  0xd9   : > { %858 = vrsqrt.f32 %v438_v46  ;;  %v493_v25 = vmul.f32 %v469_v7, %v1091_v35 }
  0xdc   : > { %v849_v44 = vpop.eup %848  ;;  %534 = vperm.xlu1 %835, %v468_v32  }
  0xdd   : > { %v473_v63 = vmul.f32 %v849_v44, %v461_v40  ;;  %v851_v48 = vpop.eup %850  ;;  %v481_v40 = vld [vmem:[%s1157_s25 + $0x28] sm:$0xff]  ;;  %v462_v44 = vld [vmem:[%s1117_s22 + $0x50] sm:$0xff] }
  0xde   : > { %v470_v54 = vmul.f32 %v851_v48, %v458_v49  ;;  %v505_v19 = vsub.f32 %v481_v40, %v493_v25  ;;  %v488_v48 = vmul.f32 %v1132_v8, %v1081_v16  ;;  %v476_v49 = vld [vmem:[%s1157_s25] sm:$0xff] }
  0xdf   : > { %559 = vperm.xlu0 %834, %v473_v63  }
  0xe0   : > { %v853_v50 = vpop.eup %852  ;;  %539 = vperm.xlu1 %835, %v469_v7   ;;  %v497_v7 = vmul.f32 %v473_v63, %v1108_v37  ;;  %v480_v37 = vld [vmem:[%s1157_s25 + $0x20] sm:$0xff]  ;;  %v494_v27 = vmul.f32 %v470_v54, %v1103_v61 }
  0xe1   : > { %v475_v52 = vmul.f32 %v853_v50, %v463_v47  ;;  %v855_v57 = vpop.eup %854  ;;  %v483_v47 = vld [vmem:[%s1157_s25 + $0x38] sm:$0xff]  ;;  %v500_v50 = vsub.f32 %v476_v49, %v488_v48 }
  0xe2   : > { %v471_v17 = vmul.f32 %v855_v57, %v459_v58  ;;  %v857_v24 = vpop.eup %856  ;;  %v509_v57 = vsub.f32 %v485_v13, %v497_v7  ;;  %v487_v58 = vld [vmem:[%s1157_s25 + $0x58] sm:$0xff] }
  0xe3   : > { %569 = vperm.xlu0 %834, %v475_v52   ;;  %v472_v29 = vmul.f32 %v857_v24, %v460_v9  ;;  %v859_v41 = vpop.eup %858  ;;  %v499_v16 = vmul.f32 %v475_v52, %v1123_v51  ;;  %v484_v24 = vld [vmem:[%s1157_s25 + $0x40] sm:$0xff] }
  0xe4   : > { %544 = vperm.xlu1 %835, %v470_v54   ;;  %v495_v62 = vmul.f32 %v471_v17, %v1106_v33  ;;  %v474_v46 = vmul.f32 %v859_v41, %v462_v44  ;;  %v478_v33 = vld [vmem:[%s1157_s25 + $0x10] sm:$0xff] }
  0xe5   : > { %v502_v8 = vsub.f32 %v478_v33, %v490_v56  ;;  %v511_v63 = vsub.f32 %v487_v58, %v499_v16  ;;  %v496_v21 = vmul.f32 %v472_v29, %v1127_v55 }
  0xe6   : > { %v507_v35 = vsub.f32 %v483_v47, %v495_v62  ;;  %v498_v52 = vmul.f32 %v474_v46, %v1137_v3 }
  0xe7   : > { %603 = vperm.xlu0 %834, %v501_v59   ;;  %v492_v59 = vmul.f32 %v468_v32, %v1095_v43  ;;  %v508_v51 = vsub.f32 %v484_v24, %v496_v21  ;;  %v486_v43 = vld [vmem:[%s1157_s25 + $0x50] sm:$0xff] }
  0xe8   : > { %549 = vperm.xlu1 %835, %v471_v17   ;;  %v506_v17 = vsub.f32 %v482_v53, %v494_v27  ;;  %v510_v32 = vsub.f32 %v486_v43, %v498_v52 }
  0xe9   : > { %v504_v60 = vsub.f32 %v480_v37, %v492_v59 }
  0xeb   : > { %613 = vperm.xlu0 %834, %v503_v12  }
  0xec   : > { %554 = vperm.xlu1 %835, %v472_v29  }
  0xef   : > { %623 = vperm.xlu0 %834, %v505_v19  }
  0xf0   : > { %564 = vperm.xlu1 %835, %v474_v46  }
  0xf3   : > { %633 = vperm.xlu0 %834, %v507_v35  }
  0xf4   : > { %598 = vperm.xlu1 %835, %v500_v50  }
  0xf7   : > { %643 = vperm.xlu0 %834, %v509_v57  }
  0xf8   : > { %608 = vperm.xlu1 %835, %v502_v8  }
  0xfb   : > { %653 = vperm.xlu0 %834, %v511_v63  }
  0xfc   : > { %618 = vperm.xlu1 %835, %v504_v60  }
 0x100   : > { %628 = vperm.xlu1 %835, %v506_v17  }
 0x104   : > { %638 = vperm.xlu1 %835, %v508_v51  }
 0x108   : > { %648 = vperm.xlu1 %835, %v510_v32  }
 0x14e   : > { %v520_v9 = vpop.permute.xlu1 %519 }
 0x14f   : > { %v515_v61 = vpop.permute.xlu0 %514  ;;  %v574_v29 = vmul.f32 %v520_v9, %v933_v10  ;;  %v575_v3 = vmul.f32 %v520_v9, %v936_v11 }
 0x150   : > { %v573_v60 = vmul.f32 %v515_v61, %v919_v4 }
 0x153   : > { %v525_v12 = vpop.permute.xlu1 %524 }
 0x154   : > { %v576_v4 = vmul.f32 %v525_v12, %v908_v0  ;;  %v577_v43 = vmul.f32 %v525_v12, %v911_v1 }
 0x157   : > { %v530_v25 = vpop.permute.xlu1 %529 }
 0x158   : > { %v578_v48 = vmul.f32 %v530_v25, %v922_v5  ;;  %v579_v10 = vmul.f32 %v530_v25, %v925_v6 }
 0x15b   : > { %v1188_v54 = vpop.permute.xlu1 %534 }
 0x15e   : > { %v560_v40 = vpop.permute.xlu0 %559 }
 0x15f   : > { %v540_v41 = vpop.permute.xlu1 %539  ;;  %v591_v51 = vmul.f32 %v560_v40, %v978_v30 }
 0x160   : > { %v582_v56 = vmul.f32 %v540_v41, %v950_v18  ;;  %v583_v33 = vmul.f32 %v540_v41, %v942_v14  ;;  %v572_v14 = vmul.f32 %v515_v61, %v914_v2 }
 0x162   : > { %v570_v44 = vpop.permute.xlu0 %569 }
 0x163   : > { %v1190_v55 = vpop.permute.xlu1 %544  ;;  %v594_v0 = vmul.f32 %v570_v44, %v1004_v42  ;;  %v595_v1 = vmul.f32 %v570_v44, %v996_v38 }
 0x166   : > { %v604_v19 = vpop.permute.xlu0 %603 }
 0x167   : > { %v550_v62 = vpop.permute.xlu1 %549  ;;  %v658_v46 = vadd.f32 %v604_v19, %v574_v29  ;;  %v659_v47 = vadd.f32 %v604_v19, %v575_v3  ;;  %v580_v3 = vmul.f32 %v1188_v54, %v955_v20  ;;  %v581_v19 = vmul.f32 %v1188_v54, %v945_v15 }
 0x168   : > { %v586_v59 = vmul.f32 %v550_v62, %v968_v26  ;;  %v587_v37 = vmul.f32 %v550_v62, %v960_v22  ;;  %v590_v22 = vmul.f32 %v560_v40, %v986_v34  ;;  %v584_v54 = vmul.f32 %v1190_v55, %v973_v28 }
 0x169   : > { %v682_v49 = vmax.f32 %v658_v46, 0.0  ;;  %v683_v11 = vmax.f32 %v659_v47, 0.0 }
 0x16a   : > { %v614_v35 = vpop.permute.xlu0 %613 }
 0x16b   : > { %706 = vst [vmem:[%s1199_s28 + $0x10] sm:$0xff] %v682_v49  ;;  %707 = vst.msk [vmem:[%s1199_s28 + $0x18] sm:$0xff] %vm247_vm0, %v683_v11  ;;  %v1206_v7 = vpop.permute.xlu1 %554  ;;  %v662_v50 = vadd.f32 %v614_v35, %v578_v48  ;;  %v663_v13 = vadd.f32 %v614_v35, %v579_v10  ;;  %v585_v49 = vmul.f32 %v1190_v55, %v963_v23 }
 0x16c   : > { %v588_v28 = vmul.f32 %v1206_v7, %v991_v36  ;;  %v589_v23 = vmul.f32 %v1206_v7, %v981_v31 }
 0x16d   : > { %v686_v57 = vmax.f32 %v662_v50, 0.0  ;;  %v687_v5 = vmax.f32 %v663_v13, 0.0 }
 0x16e   : > { %v624_v16 = vpop.permute.xlu0 %623 }
 0x16f   : > { %710 = vst [vmem:[%s1199_s28 + $0x30] sm:$0xff] %v686_v57  ;;  %711 = vst.msk [vmem:[%s1199_s28 + $0x38] sm:$0xff] %vm247_vm0, %v687_v5  ;;  %v1213_v6 = vpop.permute.xlu1 %564  ;;  %v666_v8 = vadd.f32 %v624_v16, %v582_v56  ;;  %v667_v58 = vadd.f32 %v624_v16, %v583_v33 }
 0x171   : > { %v690_v63 = vmax.f32 %v666_v8, 0.0  ;;  %v691_v18 = vmax.f32 %v667_v58, 0.0  ;;  %v592_v8 = vmul.f32 %v1213_v6, %v1011_v45  ;;  %v593_v58 = vmul.f32 %v1213_v6, %v999_v39 }
 0x172   : > { %v634_v27 = vpop.permute.xlu0 %633 }
 0x173   : > { %714 = vst [vmem:[%s1199_s28 + $0x50] sm:$0xff] %v690_v63  ;;  %715 = vst.msk [vmem:[%s1199_s28 + $0x58] sm:$0xff] %vm247_vm0, %v691_v18  ;;  %v599_v53 = vpop.permute.xlu1 %598  ;;  %v670_v17 = vadd.f32 %v634_v27, %v586_v59  ;;  %v671_v21 = vadd.f32 %v634_v27, %v587_v37 }
 0x174   : > { %v656_v24 = vadd.f32 %v599_v53, %v572_v14  ;;  %v657_v26 = vadd.f32 %v599_v53, %v573_v60 }
 0x175   : > { %v694_v2 = vmax.f32 %v670_v17, 0.0  ;;  %v695_v52 = vmax.f32 %v671_v21, 0.0 }
 0x176   : > { %v680_v32 = vmax.f32 %v656_v24, 0.0  ;;  %v681_v9 = vmax.f32 %v657_v26, 0.0  ;;  %v644_v25 = vpop.permute.xlu0 %643 }
 0x177   : > { %718 = vst [vmem:[%s1199_s28 + $0x70] sm:$0xff] %v694_v2  ;;  %719 = vst.msk [vmem:[%s1199_s28 + $0x78] sm:$0xff] %vm247_vm0, %v695_v52  ;;  %v609_v61 = vpop.permute.xlu1 %608  ;;  %v674_v41 = vadd.f32 %v644_v25, %v590_v22  ;;  %v675_v29 = vadd.f32 %v644_v25, %v591_v51 }
 0x178   : > { %704 = vst [vmem:[%s1199_s28] sm:$0xff] %v680_v32  ;;  %705 = vst.msk [vmem:[%s1199_s28 + $0x8] sm:$0xff] %vm247_vm0, %v681_v9  ;;  %v660_v30 = vadd.f32 %v609_v61, %v576_v4  ;;  %v661_v34 = vadd.f32 %v609_v61, %v577_v43 }
 0x179   : > { %v698_v12 = vmax.f32 %v674_v41, 0.0  ;;  %v699_v40 = vmax.f32 %v675_v29, 0.0 }
 0x17a   : > { %v684_v62 = vmax.f32 %v660_v30, 0.0  ;;  %v685_v46 = vmax.f32 %v661_v34, 0.0  ;;  %v654_v47 = vpop.permute.xlu0 %653 }
 0x17b   : > { %722 = vst [vmem:[%s1199_s28 + $0x90] sm:$0xff] %v698_v12  ;;  %723 = vst.msk [vmem:[%s1199_s28 + $0x98] sm:$0xff] %vm247_vm0, %v699_v40  ;;  %v619_v48 = vpop.permute.xlu1 %618  ;;  %v678_v42 = vadd.f32 %v654_v47, %v594_v0  ;;  %v679_v38 = vadd.f32 %v654_v47, %v595_v1 }
 0x17c   : > { %708 = vst [vmem:[%s1199_s28 + $0x20] sm:$0xff] %v684_v62  ;;  %709 = vst.msk [vmem:[%s1199_s28 + $0x28] sm:$0xff] %vm247_vm0, %v685_v46  ;;  %v664_v20 = vadd.f32 %v619_v48, %v580_v3  ;;  %v665_v44 = vadd.f32 %v619_v48, %v581_v19 }
 0x17d   : > { %v702_v10 = vmax.f32 %v678_v42, 0.0  ;;  %v703_v15 = vmax.f32 %v679_v38, 0.0 }
 0x17e   : > { %v688_v11 = vmax.f32 %v664_v20, 0.0  ;;  %v689_v35 = vmax.f32 %v665_v44, 0.0 }
 0x17f   : > { %726 = vst [vmem:[%s1199_s28 + $0xb0] sm:$0xff] %v702_v10  ;;  %727 = vst.msk [vmem:[%s1199_s28 + $0xb8] sm:$0xff] %vm247_vm0, %v703_v15  ;;  %v629_v50 = vpop.permute.xlu1 %628 }
 0x180   : > { %712 = vst [vmem:[%s1199_s28 + $0x40] sm:$0xff] %v688_v11  ;;  %713 = vst.msk [vmem:[%s1199_s28 + $0x48] sm:$0xff] %vm247_vm0, %v689_v35  ;;  %v668_v13 = vadd.f32 %v629_v50, %v584_v54  ;;  %v669_v56 = vadd.f32 %v629_v50, %v585_v49 }
 0x182   : > { %v692_v55 = vmax.f32 %v668_v13, 0.0  ;;  %v693_v33 = vmax.f32 %v669_v56, 0.0 }
 0x183   : > { %v639_v57 = vpop.permute.xlu1 %638 }
 0x184   : > { %716 = vst [vmem:[%s1199_s28 + $0x60] sm:$0xff] %v692_v55  ;;  %717 = vst.msk [vmem:[%s1199_s28 + $0x68] sm:$0xff] %vm247_vm0, %v693_v33  ;;  %v672_v5 = vadd.f32 %v639_v57, %v588_v28  ;;  %v673_v16 = vadd.f32 %v639_v57, %v589_v23 }
 0x186   : > { %v696_v36 = vmax.f32 %v672_v5, 0.0  ;;  %v697_v59 = vmax.f32 %v673_v16, 0.0 }
 0x187   : > { %v649_v37 = vpop.permute.xlu1 %648 }
 0x188   : > { %720 = vst [vmem:[%s1199_s28 + $0x80] sm:$0xff] %v696_v36  ;;  %721 = vst.msk [vmem:[%s1199_s28 + $0x88] sm:$0xff] %vm247_vm0, %v697_v59  ;;  %v676_v31 = vadd.f32 %v649_v37, %v592_v8  ;;  %v677_v7 = vadd.f32 %v649_v37, %v593_v58 }
 0x18a   : > { %v700_v63 = vmax.f32 %v676_v31, 0.0  ;;  %v701_v18 = vmax.f32 %v677_v7, 0.0 }
 0x18c   : > { %724 = vst [vmem:[%s1199_s28 + $0xa0] sm:$0xff] %v700_v63  ;;  %725 = vst.msk [vmem:[%s1199_s28 + $0xa8] sm:$0xff] %vm247_vm0, %v701_v18 }
 0x18d PF: > { %s13_s12 = sadd.s32 1, %s866_s12  }
 0x18e   : > { %p10_p4 = scmp.ge.s32.totalorder %s13_s12, 8  }
 0x190   :  { %12 = sbr.rel (!%p10_p4) target bundleno = 1 (0x1), region = 68 }

</bundles_post_ra>
